<compile_context>
chip_gen: v5e
topology: v5e:2x2
jax: 0.10.0
libtpu: 0.0.40
codegen_flags: <defaults>
</compile_context>

<pallas_src>
import functools

import jax
import jax.numpy as jnp
from jax import lax
from jax.experimental import pallas as pl
from jax.experimental.pallas import tpu as pltpu


def _self_attn_kernel(gamma_ref, q_ref, k_ref, v_ref, x_ref, out_ref, attn_ref,
                      *, N, N_pad):
    # q_ref: (1, Cq, TQ)   bf16 query tile (lane-dense, DMA-sliced by BlockSpec)
    # k_ref: (1, Cq, N_pad) bf16, v_ref: (1, C, N_pad) bf16 (per-batch, revisited)
    # x_ref: (1, C, TQ)    f32 residual tile
    # energy[i, j] = sum_c q[c, i] * k[c, j]  — lhs-transposed MXU contraction,
    # no in-kernel transpose needed.
    energy = lax.dot_general(q_ref[0], k_ref[0],
                             (((0,), (0,)), ((), ())),
                             preferred_element_type=jnp.float32)      # (TQ, N_pad)
    if N != N_pad:  # static: mask padded key columns
        col = lax.broadcasted_iota(jnp.int32, energy.shape, 1)
        energy = jnp.where(col < N, energy, -1e30)

    # Row softmax, f32 math; EUP reciprocal instead of an N^2 divide.
    m = jnp.max(energy, axis=-1, keepdims=True)
    p = jnp.exp(energy - m)
    inv = pl.reciprocal(jnp.sum(p, axis=-1, keepdims=True), approx=True)

    # Single f32->bf16 cast: stored to HBM AND reused as the matmul RHS.
    attn = (p * inv).astype(jnp.bfloat16)                             # (TQ, N_pad)
    attn_ref[0] = attn

    # out[c, i] = sum_j v[c, j] * attn[i, j]   (matches bmm(value, attention^T))
    out_cn = lax.dot_general(v_ref[0], attn,
                             (((1,), (1,)), ((), ())),
                             preferred_element_type=jnp.float32)      # (C, TQ)
    out_ref[0] = gamma_ref[0] * out_cn + x_ref[0]


def self_attn_forward(x_nchw, params):
    """x_nchw: (B, C, W, H) float32.

    Returns (out (B,C,W,H) f32, attention (B,N,N) bf16).  The attention map is
    kept in bf16 on purpose (its writeback is the dominant HBM stream); cast it
    in the caller only if f32 is required.
    """
    B, C, W, H = x_nchw.shape
    N = W * H
    Cq = params["wq"].shape[0]                     # C // 8

    # Pad the sequence axis to a lane multiple (128) for dense stores.
    N_pad = ((N + 127) // 128) * 128

    # ---- generation-aware VMEM budget & query-tile selection ---------------
    try:
        vmem_cap = int(pltpu.get_tpu_info().vmem_capacity_bytes)
    except Exception:  # conservative fallback
        vmem_cap = 64 * 1024 * 1024
    if vmem_cap <= 64 * 1024 * 1024:               # v7x: keep headroom below 64 MiB
        budget = 52 * 1024 * 1024
    else:                                          # v5e/v6e: use the 128 MiB VMEM
        budget = 100 * 1024 * 1024

    def vmem_estimate(tq):
        return (
            2 * 2 * (Cq * tq + Cq * N_pad + C * N_pad + tq * N_pad)  # bf16 blocks, 2-buffered
            + 2 * 4 * (2 * C * tq)                                   # f32 x + out blocks, 2-buffered
            + 2 * 4 * tq * N_pad                                     # f32 energy + p intermediates
            + (2 << 20)                                              # slack
        )

    TQ = 128
    for t in (512, 256, 128):
        if N_pad % t == 0 and vmem_estimate(t) <= budget:
            TQ = t
            break
    NQ = N_pad // TQ
    vmem_limit = int(min(max(vmem_estimate(TQ), 16 * 1024 * 1024), budget))

    # ---- fused QKV projection (the 1x1 convs): O(C^2 N), done once in XLA --
    x_cn = x_nchw.reshape(B, C, N).astype(jnp.float32)
    w_all = jnp.concatenate(
        [params["wq"], params["wk"], params["wv"]], axis=0).astype(jnp.float32)
    b_all = jnp.concatenate(
        [params["bq"], params["bk"], params["bv"]], axis=0).astype(jnp.float32)
    qkv = jnp.einsum("pc,bcn->bpn", w_all, x_cn) + b_all[None, :, None]  # (B,P,N) f32
    if N_pad != N:
        qkv = jnp.pad(qkv, ((0, 0), (0, 0), (0, N_pad - N)))
        x_cn = jnp.pad(x_cn, ((0, 0), (0, 0), (0, N_pad - N)))
    qkv = qkv.astype(jnp.bfloat16)
    q_p = qkv[:, 0:Cq]                             # (B, Cq, N_pad) bf16
    k_p = qkv[:, Cq:2 * Cq]                        # (B, Cq, N_pad) bf16
    v_p = qkv[:, 2 * Cq:]                          # (B, C,  N_pad) bf16

    gamma = params["gamma"].reshape(1).astype(jnp.float32)
    kernel = functools.partial(_self_attn_kernel, N=N, N_pad=N_pad)

    out_pad, attn_pad = pl.pallas_call(
        kernel,
        out_shape=(
            jax.ShapeDtypeStruct((B, C, N_pad), jnp.float32),
            jax.ShapeDtypeStruct((B, N_pad, N_pad), jnp.bfloat16),
        ),
        grid=(B, NQ),
        in_specs=[
            pl.BlockSpec(memory_space=pltpu.MemorySpace.SMEM),        # gamma scalar
            pl.BlockSpec((1, Cq, TQ), lambda b, q: (b, 0, q)),        # Q query tile
            pl.BlockSpec((1, Cq, N_pad), lambda b, q: (b, 0, 0)),     # K (per batch)
            pl.BlockSpec((1, C, N_pad), lambda b, q: (b, 0, 0)),      # V (per batch)
            pl.BlockSpec((1, C, TQ), lambda b, q: (b, 0, q)),         # residual x tile
        ],
        out_specs=(
            pl.BlockSpec((1, C, TQ), lambda b, q: (b, 0, q)),         # out query tile
            pl.BlockSpec((1, TQ, N_pad), lambda b, q: (b, q, 0)),     # attn query tile
        ),
        compiler_params=pltpu.CompilerParams(
            dimension_semantics=("parallel", "parallel"),
            vmem_limit_bytes=vmem_limit,
        ),
    )(gamma, q_p, k_p, v_p, x_cn)

    out_nchw = out_pad[:, :, :N].reshape(B, C, W, H)
    attn = attn_pad[:, :N, :N]                     # bf16 attention map
    return out_nchw, attn


def init_params(key, in_dim):
    """Deterministic parameter init mirroring the module's __init__ shapes."""
    cq = in_dim // 8
    k1, k2, k3, k4, k5, k6 = jax.random.split(key, 6)
    bound = 1.0 / jnp.sqrt(in_dim)
    return {
        # Conv2d(in_dim, in_dim//8, 1) weights, squeezed from (Cout, Cin, 1, 1).
        "wq": jax.random.uniform(k1, (cq, in_dim), jnp.float32, -bound, bound),
        "bq": jax.random.uniform(k2, (cq,), jnp.float32, -bound, bound),
        "wk": jax.random.uniform(k3, (cq, in_dim), jnp.float32, -bound, bound),
        "bk": jax.random.uniform(k4, (cq,), jnp.float32, -bound, bound),
        "wv": jax.random.uniform(k5, (in_dim, in_dim), jnp.float32, -bound, bound),
        "bv": jax.random.uniform(k6, (in_dim,), jnp.float32, -bound, bound),
        # gamma initialized to zero, as in the PyTorch module.
        "gamma": jnp.zeros((1,), jnp.float32),
    }


def _reference(x_nchw, params):
    """Pure-JAX f32 reference mirroring the PyTorch forward."""
    B, C, W, H = x_nchw.shape
    N = W * H
    xf = x_nchw.reshape(B, C, N)                                   # (B, C, N)
    q = jnp.einsum("oc,bcn->bon", params["wq"], xf) + params["bq"][None, :, None]
    k = jnp.einsum("oc,bcn->bon", params["wk"], xf) + params["bk"][None, :, None]
    v = jnp.einsum("oc,bcn->bon", params["wv"], xf) + params["bv"][None, :, None]
    energy = jnp.einsum("bci,bcj->bij", q, k)                      # (B, N, N)
    attn = jax.nn.softmax(energy, axis=-1)
    out = jnp.einsum("bcj,bij->bci", v, attn)                      # (B, C, N)
    out = params["gamma"][0] * out.reshape(B, C, W, H) + x_nchw
    return out, attn


if __name__ == "__main__":
    B, C, W, H = 2, 16, 8, 8          # in_dim=16 so in_dim // 8 = 2
    key = jax.random.PRNGKey(0)
    kx, kp = jax.random.split(key)
    x = jax.random.normal(kx, (B, C, W, H), jnp.float32)
    params = init_params(kp, C)
    # The module initializes gamma to 0 (which makes out == x trivially);
    # use a nonzero gamma here so the attention path is actually exercised.
    params["gamma"] = jnp.array([0.5], jnp.float32)

    out, attn = self_attn_forward(x, params)
    out = jax.block_until_ready(out)
    attn = jax.block_until_ready(attn)

    out_ref, attn_ref = _reference(x, params)
    # bf16 matmul operands, bf16 attention writeback and approx reciprocal
    # => bf16-level tolerances.
    assert jnp.allclose(out, out_ref, atol=2e-2, rtol=2e-2)
    assert jnp.allclose(attn.astype(jnp.float32), attn_ref, atol=2e-2, rtol=2e-2)

    print("KERNEL_OK")
</pallas_src>

<mosaic_0001>
module attributes {stable_mosaic.version = 11 : i64} {
  func.func @_self_attn_kernel(%arg0: i32, %arg1: i32, %arg2: memref<1xf32, #tpu.memory_space<smem>>, %arg3: memref<1x2x128xbf16, #tpu.memory_space<vmem>>, %arg4: memref<1x2x128xbf16, #tpu.memory_space<vmem>>, %arg5: memref<1x16x128xbf16, #tpu.memory_space<vmem>>, %arg6: memref<1x16x128xf32, #tpu.memory_space<vmem>>, %arg7: memref<1x16x128xf32, #tpu.memory_space<vmem>>, %arg8: memref<1x128x128xbf16, #tpu.memory_space<vmem>>) attributes {dimension_semantics = [#tpu.dimension_semantics<parallel>, #tpu.dimension_semantics<parallel>], iteration_bounds = array<i64: 2, 1>, scalar_prefetch = 0 : i64, scratch_operands = 0 : i64, tpu.core_type = #tpu.core_type<tc>, window_params = [{transform_indices = @transform_0, window_bounds = array<i64: 1>}, {transform_indices = @transform_1, window_bounds = array<i64: 1, 2, 128>}, {transform_indices = @transform_2, window_bounds = array<i64: 1, 2, 128>}, {transform_indices = @transform_3, window_bounds = array<i64: 1, 16, 128>}, {transform_indices = @transform_4, window_bounds = array<i64: 1, 16, 128>}, {transform_indices = @transform_5, window_bounds = array<i64: 1, 16, 128>}, {transform_indices = @transform_6, window_bounds = array<i64: 1, 128, 128>}]} {
    %c0 = arith.constant 0 : index
    %c0_0 = arith.constant 0 : index
    %c0_1 = arith.constant 0 : index
    %0 = vector.load %arg3[%c0, %c0_0, %c0_1] : memref<1x2x128xbf16, #tpu.memory_space<vmem>>, vector<1x2x128xbf16>
    %1 = vector.shape_cast %0 : vector<1x2x128xbf16> to vector<2x128xbf16>
    %c0_2 = arith.constant 0 : index
    %c0_3 = arith.constant 0 : index
    %c0_4 = arith.constant 0 : index
    %2 = vector.load %arg4[%c0_2, %c0_3, %c0_4] : memref<1x2x128xbf16, #tpu.memory_space<vmem>>, vector<1x2x128xbf16>
    %3 = vector.shape_cast %2 : vector<1x2x128xbf16> to vector<2x128xbf16>
    %cst = arith.constant dense<0.000000e+00> : vector<128x128xf32>
    %4 = tpu.matmul %1, %3, %cst {dimension_numbers = #tpu.dot_dimension_numbers<[0], [0], [1], [1], [0, 1, 1, 1], [], []>} : vector<2x128xbf16>, vector<2x128xbf16>, vector<128x128xf32> -> vector<128x128xf32>
    %5 = tpu.iota {dimensions = array<i32: 1>} : vector<128x128xi32>
    %c64_i32 = arith.constant 64 : i32
    %6 = vector.broadcast %c64_i32 : i32 to vector<128x128xi32>
    %7 = arith.cmpi slt, %5, %6 : vector<128x128xi32>
    %cst_5 = arith.constant -1.000000e+30 : f32
    %8 = vector.broadcast %cst_5 : f32 to vector<128x128xf32>
    %9 = arith.select %7, %4, %8 : vector<128x128xi1>, vector<128x128xf32>
    %cst_6 = arith.constant dense<0xFF800000> : vector<128xf32>
    %10 = vector.multi_reduction <maximumf>, %9, %cst_6 [1] : vector<128x128xf32> to vector<128xf32>
    %11 = vector.shape_cast %10 : vector<128xf32> to vector<128x1xf32>
    %12 = vector.broadcast %11 : vector<128x1xf32> to vector<128x128xf32>
    %13 = arith.subf %9, %12 : vector<128x128xf32>
    %14 = math.exp %13 : vector<128x128xf32>
    %cst_7 = arith.constant dense<0.000000e+00> : vector<128xf32>
    %15 = vector.multi_reduction <add>, %14, %cst_7 [1] : vector<128x128xf32> to vector<128xf32>
    %16 = vector.shape_cast %15 : vector<128xf32> to vector<128x1xf32>
    %17 = tpu.reciprocal %16 {approx = true} : vector<128x1xf32> -> vector<128x1xf32>
    %18 = vector.broadcast %17 : vector<128x1xf32> to vector<128x128xf32>
    %19 = arith.mulf %14, %18 : vector<128x128xf32>
    %20 = arith.truncf %19 : vector<128x128xf32> to vector<128x128xbf16>
    %c0_8 = arith.constant 0 : index
    %c0_9 = arith.constant 0 : index
    %c0_10 = arith.constant 0 : index
    %21 = vector.load %arg8[%c0_8, %c0_9, %c0_10] : memref<1x128x128xbf16, #tpu.memory_space<vmem>>, vector<1x128x128xbf16>
    %22 = vector.shape_cast %21 : vector<1x128x128xbf16> to vector<128x128xbf16>
    %23 = vector.shape_cast %20 : vector<128x128xbf16> to vector<1x128x128xbf16>
    tpu.vector_store %arg8[%c0_8, %c0_9, %c0_10], %23 {strides = array<i32>} : memref<1x128x128xbf16, #tpu.memory_space<vmem>>, vector<1x128x128xbf16>,
    %c0_11 = arith.constant 0 : index
    %c0_12 = arith.constant 0 : index
    %c0_13 = arith.constant 0 : index
    %24 = vector.load %arg5[%c0_11, %c0_12, %c0_13] : memref<1x16x128xbf16, #tpu.memory_space<vmem>>, vector<1x16x128xbf16>
    %25 = vector.shape_cast %24 : vector<1x16x128xbf16> to vector<16x128xbf16>
    %cst_14 = arith.constant dense<0.000000e+00> : vector<16x128xf32>
    %26 = tpu.matmul %25, %20, %cst_14 {dimension_numbers = #tpu.dot_dimension_numbers<[1], [1], [0], [0], [0, 0, 1, 0], [], []>} : vector<16x128xbf16>, vector<128x128xbf16>, vector<16x128xf32> -> vector<16x128xf32>
    %c0_15 = arith.constant 0 : index
    %27 = memref.load %arg2[%c0_15] : memref<1xf32, #tpu.memory_space<smem>>
    %28 = vector.broadcast %27 : f32 to vector<16x128xf32>
    %29 = arith.mulf %28, %26 : vector<16x128xf32>
    %c0_16 = arith.constant 0 : index
    %c0_17 = arith.constant 0 : index
    %c0_18 = arith.constant 0 : index
    %30 = vector.load %arg6[%c0_16, %c0_17, %c0_18] : memref<1x16x128xf32, #tpu.memory_space<vmem>>, vector<1x16x128xf32>
    %31 = vector.shape_cast %30 : vector<1x16x128xf32> to vector<16x128xf32>
    %32 = arith.addf %29, %31 : vector<16x128xf32>
    %c0_19 = arith.constant 0 : index
    %c0_20 = arith.constant 0 : index
    %c0_21 = arith.constant 0 : index
    %33 = vector.load %arg7[%c0_19, %c0_20, %c0_21] : memref<1x16x128xf32, #tpu.memory_space<vmem>>, vector<1x16x128xf32>
    %34 = vector.shape_cast %33 : vector<1x16x128xf32> to vector<16x128xf32>
    %35 = vector.shape_cast %32 : vector<16x128xf32> to vector<1x16x128xf32>
    tpu.vector_store %arg7[%c0_19, %c0_20, %c0_21], %35 {strides = array<i32>} : memref<1x16x128xf32, #tpu.memory_space<vmem>>, vector<1x16x128xf32>,
    return
  }
  func.func @transform_0(%arg0: i32, %arg1: i32) -> i32 {
    %c0_i32 = arith.constant 0 : i32
    %c0_i32_0 = arith.constant 0 : i32
    return %c0_i32 : i32
  }
  func.func @transform_1(%arg0: i32, %arg1: i32) -> (i32, i32, i32) {
    %c0_i32 = arith.constant 0 : i32
    %c0_i32_0 = arith.constant 0 : i32
    return %arg0, %c0_i32, %arg1 : i32, i32, i32
  }
  func.func @transform_2(%arg0: i32, %arg1: i32) -> (i32, i32, i32) {
    %c0_i32 = arith.constant 0 : i32
    %c0_i32_0 = arith.constant 0 : i32
    %c0_i32_1 = arith.constant 0 : i32
    return %arg0, %c0_i32, %c0_i32_0 : i32, i32, i32
  }
  func.func @transform_3(%arg0: i32, %arg1: i32) -> (i32, i32, i32) {
    %c0_i32 = arith.constant 0 : i32
    %c0_i32_0 = arith.constant 0 : i32
    %c0_i32_1 = arith.constant 0 : i32
    return %arg0, %c0_i32, %c0_i32_0 : i32, i32, i32
  }
  func.func @transform_4(%arg0: i32, %arg1: i32) -> (i32, i32, i32) {
    %c0_i32 = arith.constant 0 : i32
    %c0_i32_0 = arith.constant 0 : i32
    return %arg0, %c0_i32, %arg1 : i32, i32, i32
  }
  func.func @transform_5(%arg0: i32, %arg1: i32) -> (i32, i32, i32) {
    %c0_i32 = arith.constant 0 : i32
    %c0_i32_0 = arith.constant 0 : i32
    return %arg0, %c0_i32, %arg1 : i32, i32, i32
  }
  func.func @transform_6(%arg0: i32, %arg1: i32) -> (i32, i32, i32) {
    %c0_i32 = arith.constant 0 : i32
    %c0_i32_0 = arith.constant 0 : i32
    return %arg0, %arg1, %c0_i32 : i32, i32, i32
  }
}

</mosaic_0001>

<bundles_post_ra>
// kernel: tpu_custom_call.1
= control target key start
LH: loop header
LB: loop body
LE: loop exit
PB: predicated region body
PF: predicated region fallthrough
CT: control target
= control target key end

     0   :  { %s1803_s0 = inlined_call_operand.<no memory space> [shape: f32[1], index: 0, kind: input, shape index: {}]   ;;  %s1804_s1 = inlined_call_operand.vmem [shape: bf16[2,2,128], index: 1, kind: input, shape index: {}]   ;;  %s1805_s2 = inlined_call_operand.hbm [shape: bf16[2,2,128], index: 2, kind: input, shape index: {}]   ;;  %s1806_s3 = inlined_call_operand.hbm [shape: bf16[2,16,128], index: 3, kind: input, shape index: {}]   ;;  %s1807_s4 = inlined_call_operand.hbm [shape: f32[2,16,128], index: 4, kind: input, shape index: {}]   ;;  %s1808_s5 = inlined_call_operand.hbm [shape: f32[2,16,128], index: 5, kind: output, shape index: {0}]   ;;  %s1809_s6 = inlined_call_operand.hbm [shape: bf16[2,128,128], index: 6, kind: output, shape index: {1}]  }
   0x1   :  { %1814 = sst [smem:[#allocation20_spill]] %s1806_s3 }
   0x2   :  { %12 = sst [smem:[#allocation2]] %s1803_s0 }
   0x3   :  { %13 = vsyncpa [#allocation4], 0 }
   0x4   :  { %15 = vsyncpa [#allocation4 + $0x1], 0 }
   0x5   :  { %16 = vsyncpa [#allocation7], 0 }
   0x6   :  { %18 = vsyncpa [#allocation7 + $0x1], 0 }
   0x7   :  { %19 = vsyncpa [#allocation5], 0 }
   0x8   :  { %21 = vsyncpa [#allocation5 + $0x1], 0 }
   0x9   :  { %22 = vsyncpa [#allocation11], 0 }
   0xa   :  { %24 = vsyncpa [#allocation11 + $0x1], 0  ;;  %s1482_s23 = smov 0   ;;  %s1484_s24 = smov 0  }
   0xb   :  { %s1486_s25 = smov 0   ;;  %s1488_s26 = smov 0  }
   0xc   :  { %s1490_s27 = smov 0   ;;  %s1492_s28 = smov 0  }
   0xd LB: > { %1815 = sst [smem:[#allocation16_spill]] %s1422_s25  ;;  %s1513_s0 = sadd.s32 4294967295, %s1434_s28   ;;  %s1434_s28 = sphi %s1492_s28, %s30_s28   ;;  %s1430_s27 = sphi %s1490_s27, %s1833_s27   ;;  %s1426_s26 = sphi %s1488_s26, %s1832_s26   ;;  %s1422_s25 = sphi %s1486_s25, %s1828_s25   ;;  %s1418_s24 = sphi %s1484_s24, %s1831_s24   ;;  %s1414_s23 = sphi %s1482_s23, %s1830_s23  }
   0xe   : > { %1816 = sst [smem:[#allocation17_spill]] %s1434_s28  ;;  %s989_s29 = sadd.s32 4294967294, %s1434_s28  }
   0xf   : > { %s42_s30 = sadd.s32 1, %s1430_s27  ;;  %s98_s7 = sadd.s32 1, %s1422_s25 }
  0x10   : > { %p44_p0 = scmp.ge.s32.totalorder %s42_s30, 2  ;;  %p105_p1 = scmp.ne.s32.totalorder %s1422_s25, %s1418_s24 }
  0x11   : > { %p106_p2 = scmp.eq.s32.totalorder %s1434_s28, 0  ;;  %p111_p3 = scmp.ne.s32.totalorder %s1418_s24, %s1414_s23 }
  0x12   : > { %s1835_s30 = smov (%p44_p0, %s42_s30), 0  ;;  %p112_p5 = scmp.eq.s32.totalorder %s1513_s0, 0 }
  0x13   : > { %1817 = sst [smem:[#allocation18_spill]] %s1835_s30  ;;  %p1525_p4 = por %p106_p2, %p105_p1 }
  0x14   : > { %s95_s9 = ssub.s32 %s1430_s27, %s1835_s30  ;;  %p191_p6 = scmp.eq.s32.totalorder %s1513_s0, 1 }
  0x15   : > { %p96_p7 = scmp.eq.s32.totalorder %s95_s9, 0  ;;  %p1533_p8 = por %p112_p5, %p111_p3 }
  0x16   : > { %p1537_p9 = por %p191_p6, %p105_p1  ;;  %p197_p10 = scmp.eq.s32.totalorder %s989_s29, 1 }
  0x17   : > { %s1542_s12 = scalar_select %p96_p7, %s1422_s25, %s98_s7  }
  0x18   : > { %p1544_p11 = por %p197_p10, %p111_p3  ;;  %p991_p12 = scmp.ge.s32.totalorder %s1434_s28, 2 }
  0x19   : > { %1821 = sst [smem:[#allocation19_spill]] %s1542_s12  ;;  %p1103_p13 = scmp.lt.s32.totalorder %s1434_s28, 2 }
  0x1a   : > { %s1551_s14 = sand.u32 1, %s1422_s25   ;;  %s274_s15 = sand.u32 1, %s1434_s28  }
  0x1b   : > { %s992_s16 = sshll.u32 %s1551_s14, 3  ;;  %p1557_p0 = pnand %p1103_p13, %p1525_p4 }
  0x1c   : > { %s1023_s18 = sshll.u32 %s1430_s27, 3  ;;  %s1824_s3 = sld [smem:[#allocation20_spill]] }
  0x1d   : > { %s278_s29 = scalar_lea.vmem [#allocation6], %s992_s16  ;;  %s1565_s8 = scalar_lea.sflag [#allocation7], %s274_s15 }
  0x1e   : > { %s286_s7 = sshll.u32 %s278_s29, 4  ;;  %s1436_s9 = smov 64   ;;  %s287_s7 = int_to_ptr.vmem [resolvable:$true] %s286_s7 }
  0x1f   : > { %s1437_s30 = smov 4   ;;  %p998_p1 = scmp.ge.s32.totalorder %s1434_s28, 1 }
  0x20   : > { %p317_p2 = scmp.lt.s32.totalorder %s1434_s28, 3  ;;  %s263_s20 = scalar_lea.hbm %s1805_s2, %s1430_s27 }
  0x21   : > { %s260_s29 = scalar_lea.vmem [#allocation3], %s1551_s14  ;;  %s1438_s19 = smov 128  }
  0x22   : > { %s283_s21 = scalar_lea.hbm %s1824_s3, %s1023_s18  ;;  %p1572_p3 = pnand %p998_p1, %p317_p2 }
  0x23   : > { %s284_s22 = sshll.u32 %s283_s21, 4  ;;  %s265_s21 = sshll.u32 %s263_s20, 4  ;;  %s285_s22 = int_to_ptr.hbm [resolvable:$true] %s284_s22  ;;  %s266_s21 = int_to_ptr.hbm [resolvable:$true] %s265_s21 }
  0x24   : > { %1092 = dma.hbm_to_vmem [thread:$0]  (!%p1557_p0), %s285_s22, 128, %s287_s7, %s1565_s8, %s1436_s9, %s1436_s9, %s1437_s30  }
  0x25   : > { %s267_s15 = sshll.u32 %s260_s29, 4  ;;  %s258_s3 = scalar_lea.sflag [#allocation4], %s1551_s14  ;;  %s268_s15 = int_to_ptr.vmem [resolvable:$true] %s267_s15 }
  0x26   : > { %1089 = dma.hbm_to_vmem [thread:$0]  (!%p1557_p0), %s266_s21, 16, %s268_s15, %s258_s3  }
  0x27   : > { %s995_s30 = sshll.u32 %s1551_s14, 4  ;;  %s1024_s22 = sshll.u32 %s1430_s27, 4 }
  0x28   : > { %s306_s12 = scalar_lea.hbm %s1807_s4, %s1024_s22  ;;  %s300_s28 = scalar_lea.vmem [#allocation8], %s995_s30 }
  0x29   : > { %s307_s25 = sshll.u32 %s306_s12, 4  ;;  %s309_s16 = sshll.u32 %s300_s28, 4  ;;  %s308_s25 = int_to_ptr.hbm [resolvable:$true] %s307_s25  ;;  %s310_s16 = int_to_ptr.vmem [resolvable:$true] %s309_s16 }
  0x2a   : > { %s1439_s20 = smov 8   ;;  %321 = sbr.rel (%p1572_p3) target bundleno = 946 (0x3b2), region = 40 }
  0x2b   : > { %1095 = dma.hbm_to_vmem [thread:$0]  (!%p1557_p0), %s308_s25, 256, %s310_s16, %s1565_s8, %s1438_s19, %s1438_s19, %s1439_s20  }
  0x2c   : > { %s1595_s3 = sand.u32 (!%p1572_p3), 1, %s1418_s24  }
  0x2d   : > { %s324_s14 = scalar_lea.sflag (!%p1572_p3), [#allocation4], %s1595_s3  ;;  %s326_s21 = scalar_lea.vmem (!%p1572_p3), [#allocation3], %s1595_s3 }
  0x2f   : > { %1397 = dma.done.wait (%p1533_p8), %s324_s14, 16  }
  0x30   : > { %1399 = vsyncadd (%p1533_p8), %s324_s14, 4294967280  ;;  %s332_s25 = sand.u32 1, %s1513_s0   ;;  %s999_s28 = sshll.u32 %s1595_s3, 3 }
  0x31   : > { %s333_s12 = scalar_lea.sflag [#allocation7], %s332_s25  ;;  %s1605_s17 = scalar_lea.vmem [#allocation6], %s999_s28 }
  0x32   : > { %1401 = dma.done.wait (%p1533_p8), %s333_s12, 384  }
  0x33   : > { %1403 = vsyncadd (%p1533_p8), %s333_s12, 4294966912  ;;  %p396_p4 = scmp.lt.s32.totalorder %s1426_s26, 1  ;;  %vm447_vm0 = vcmask 1040384   ;;  %v405_v1 = vld [vmem:[%s326_s21] sm:$0x1]  ;;  %vm422_vm1 = vcmask 15360   ;;  %v500_v18 = vlaneseq }
  0x34   : > { %v449_v2 = vsel %vm447_vm0, %v405_v1, 0  ;;  %s1002_s0 = sshll.u32 %s1595_s3, 6  ;;  %s1027_s30 = sshll.u32 %s1426_s26, 6 }
  0x35   : > { %s397_s8 = scalar_select %p396_p4, %s1426_s26, 1  ;;  %458 = vmatpush.bf16.msra.mxu0 %v449_v2  ;;  %1075 = vmatpush.bf16.msra.mxu2 %v449_v2  ;;  %v501_v19 = vand.u32 127, %v500_v18 }
  0x36   : > { %s1723_s10 = scalar_lea.vmem [#allocation10], %s1002_s0  ;;  %s812_s16 = scalar_lea.hbm %s1809_s6, %s1027_s30 }
  0x37   : > { %s401_s15 = scalar_lea.vmem %s1804_s1, %s397_s8  ;;  %vm502_vm2 = vcmp.lt.s32.totalorder %v501_v19, 64  ;;  %s813_s22 = sshll.u32 %s1723_s10, 4  ;;  %s814_s22 = int_to_ptr.vmem [resolvable:$true] %s813_s22 }
  0x38   : > { %v404_v0 = vld [vmem:[%s401_s15] sm:$0x1]  ;;  %s815_s19 = sshll.u32 %s812_s16, 4  ;;  %s781_s20 = scalar_lea.sflag [#allocation11], %s1595_s3  ;;  %s816_s19 = int_to_ptr.hbm [resolvable:$true] %s815_s19 }
  0x39   : > { %406 = vxpose.xlu0.c.b16.start.end [1/1] (short) %v404_v0, 128  ;;  %s1330_s14 = sshra.s32 %s816_s19, 4  ;;  %s1336_s12 = scalar_lea.hbm %s1809_s6, 128  ;;  %s1331_s14 = int_to_ptr.hbm [resolvable:$true] %s1330_s14 }
  0x3a   : > { %s1332_s21 = scalar_lea.hbm %s1331_s14, 64  ;;  %p1337_p8 = scmp.lt.s32.totalorder %s1331_s14, %s1809_s6 }
  0x3b   : > { %p1333_p5 = scmp.ne.s32.totalorder %s1331_s14, %s1332_s21  ;;  %p1338_p10 = scmp.lt.s32.totalorder %s1336_s12, %s1332_s21 }
  0x3d   : > { %p1334_p6 = pnand %p1333_p5, %p1537_p9  ;;  %p1339_p13 = por %p1338_p10, %p1337_p8 }
  0x3f   : > { %p1335_p7 = pneg %p1334_p6 }
  0x41   : > { %p1340_p0 = pnand %p1339_p13, %p1335_p7 }
  0xe5   : > { %v414_v3 = vpop.trf.xlu0 }
  0xe6   : > { %1003 = vmatmul.msk.bf16.vlgmr.msra.gmra.mxu0 %vm422_vm1, %v414_v3 }
  0xf5   : > { %v415_v4 = vpop.trf.xlu0 }
  0xf6   : > { %1004 = vmatmul.msk.bf16.gmra.mxu0 %vm422_vm1, %v415_v4 }
 0x105   : > { %v416_v5 = vpop.trf.xlu0 }
 0x106   : > { %1005 = vmatmul.msk.bf16.gmra.mxu0 %vm422_vm1, %v416_v5 }
 0x115   : > { %v417_v6 = vpop.trf.xlu0 }
 0x116   : > { %1006 = vmatmul.msk.bf16.gmra.mxu0 %vm422_vm1, %v417_v6 }
 0x125   : > { %v418_v7 = vpop.trf.xlu0 }
 0x126   : > { %1007 = vmatmul.msk.bf16.vlgmr.msra.gmra.mxu2 %vm422_vm1, %v418_v7 }
 0x135   : > { %v419_v8 = vpop.trf.xlu0 }
 0x136   : > { %1008 = vmatmul.msk.bf16.gmra.mxu2 %vm422_vm1, %v419_v8 }
 0x145   : > { %v420_v9 = vpop.trf.xlu0 }
 0x146   : > { %1009 = vmatmul.msk.bf16.gmra.mxu2 %vm422_vm1, %v420_v9 }
 0x155   : > { %v421_v10 = vpop.trf.xlu0 }
 0x156   : > { %1010 = vmatmul.msk.bf16.gmra.mxu2 %vm422_vm1, %v421_v10 }
 0x163   : > { %v460_v12 = vpop.f32.mrf.mxu0 }
 0x164   : > { %v1649_v41 = vsel %vm502_vm2, %v460_v12, -1e+30 }
 0x16b   : > { %v462_v14 = vpop.f32.mrf.mxu0 }
 0x16c   : > { %v1661_v44 = vsel %vm502_vm2, %v462_v14, -1e+30 }
 0x173   : > { %v465_v16 = vpop.f32.mrf.mxu0 }
 0x174   : > { %v1641_v39 = vsel %vm502_vm2, %v465_v16, -1e+30 }
 0x17b   : > { %v467_v22 = vpop.f32.mrf.mxu0 }
 0x17c   : > { %v1657_v43 = vsel %vm502_vm2, %v467_v22, -1e+30 }
 0x183   : > { %v470_v25 = vpop.f32.mrf.mxu0 }
 0x184   : > { %v1636_v36 = vsel %vm502_vm2, %v470_v25, -1e+30 }
 0x18b   : > { %v472_v29 = vpop.f32.mrf.mxu0 }
 0x18c   : > { %v1652_v42 = vsel %vm502_vm2, %v472_v29, -1e+30 }
 0x193   : > { %v475_v33 = vpop.f32.mrf.mxu0 }
 0x194   : > { %v1631_v34 = vsel %vm502_vm2, %v475_v33, -1e+30 }
 0x19b   : > { %v477_v38 = vpop.f32.mrf.mxu0 }
 0x19c   : > { %v1644_v40 = vsel %vm502_vm2, %v477_v38, -1e+30 }
 0x1a9   : > { %v480_v11 = vpop.f32.mrf.mxu2 }
 0x1aa   : > { %v511_v31 = vsel %vm502_vm2, %v480_v11, -1e+30 }
 0x1b1   : > { %v482_v13 = vpop.f32.mrf.mxu2 }
 0x1b2   : > { %v512_v37 = vsel %vm502_vm2, %v482_v13, -1e+30 }
 0x1b9   : > { %v485_v15 = vpop.f32.mrf.mxu2 }
 0x1ba   : > { %v513_v27 = vsel %vm502_vm2, %v485_v15, -1e+30 }
 0x1c1   : > { %v487_v17 = vpop.f32.mrf.mxu2 }
 0x1c2   : > { %v514_v35 = vsel %vm502_vm2, %v487_v17, -1e+30 }
 0x1c9   : > { %v490_v20 = vpop.f32.mrf.mxu2 }
 0x1ca   : > { %v515_v21 = vsel %vm502_vm2, %v490_v20, -1e+30 }
 0x1cb   : > { %543 = vmax.xlane.f32.xlu1 %v515_v21 }
 0x1d1   : > { %v492_v23 = vpop.f32.mrf.mxu2 }
 0x1d2   : > { %v516_v24 = vsel %vm502_vm2, %v492_v23, -1e+30 }
 0x1d3   : > { %545 = vmax.xlane.f32.xlu2 %v516_v24 }
 0x1d9   : > { %v495_v26 = vpop.f32.mrf.mxu2 }
 0x1da   : > { %v517_v28 = vsel %vm502_vm2, %v495_v26, -1e+30 }
 0x1db   : > { %539 = vmax.xlane.f32.xlu2 %v513_v27  ;;  %547 = vmax.xlane.f32.xlu0 %v517_v28 }
 0x1e1   : > { %v497_v30 = vpop.f32.mrf.mxu2 }
 0x1e2   : > { %v518_v32 = vsel %vm502_vm2, %v497_v30, -1e+30 }
 0x1e3   : > { %535 = vmax.xlane.f32.xlu2 %v511_v31  ;;  %549 = vmax.xlane.f32.xlu1 %v518_v32 }
 0x1eb   : > { %531 = vmax.xlane.f32.xlu2 %v1631_v34  ;;  %541 = vmax.xlane.f32.xlu1 %v514_v35 }
 0x1f3   : > { %527 = vmax.xlane.f32.xlu2 %v1636_v36  ;;  %537 = vmax.xlane.f32.xlu1 %v512_v37 }
 0x1fb   : > { %523 = vmax.xlane.f32.xlu2 %v1641_v39  ;;  %533 = vmax.xlane.f32.xlu1 %v1644_v40 }
 0x203   : > { %519 = vmax.xlane.f32.xlu2 %v1649_v41  ;;  %529 = vmax.xlane.f32.xlu1 %v1652_v42 }
 0x20b   : > { %525 = vmax.xlane.f32.xlu1 %v1657_v43 }
 0x213   : > { %521 = vmax.xlane.f32.xlu1 %v1661_v44 }
 0x23e   : > { %v544_v46 = vpop.xlane.xlu1 %543 }
 0x23f   : > { %v563_v51 = vsub.f32 %v515_v21, %v544_v46 }
 0x241   : > { %v591_v53 = vmul.f32 1.442695, %v563_v51 }
 0x246   : > { %v546_v45 = vpop.xlane.xlu2 %545 }
 0x247   : > { %v564_v58 = vsub.f32 %v516_v24, %v546_v45 }
 0x249   : > { %v593_v61 = vmul.f32 1.442695, %v564_v58 }
 0x24e   : > { %v540_v47 = vpop.xlane.xlu2 %539  ;;  %v548_v48 = vpop.xlane.xlu0 %547 }
 0x24f   : > { %v565_v49 = vsub.f32 %v517_v28, %v548_v48  ;;  %v561_v59 = vsub.f32 %v513_v27, %v540_v47 }
 0x251   : > { %v595_v50 = vmul.f32 1.442695, %v565_v49  ;;  %v587_v62 = vmul.f32 1.442695, %v561_v59 }
 0x253   : > { %1162 = vpow2.f32 %v595_v50 }
 0x254   : > { %1164 = vpow2.f32 %v591_v53 }
 0x256   : > { %v550_v52 = vpop.xlane.xlu1 %549  ;;  %v536_v55 = vpop.xlane.xlu2 %535 }
 0x257   : > { %v566_v54 = vsub.f32 %v518_v32, %v550_v52  ;;  %v559_v2 = vsub.f32 %v511_v31, %v536_v55 }
 0x259   : > { %v597_v56 = vmul.f32 1.442695, %v566_v54  ;;  %v1664_v57 = vpop.eup %1162  ;;  %v583_v5 = vmul.f32 1.442695, %v559_v2 }
 0x25a   : > { %627 = vadd.xlane.f32.xlu2 %v1664_v57  ;;  %v1667_v63 = vpop.eup %1164 }
 0x25b   : > { %1166 = vpow2.f32 %v597_v56 }
 0x25c   : > { %1168 = vpow2.f32 %v593_v61 }
 0x25d   : > { %1170 = vpow2.f32 %v587_v62 }
 0x25e   : > { %v542_v60 = vpop.xlane.xlu1 %541  ;;  %v532_v1 = vpop.xlane.xlu2 %531  ;;  %1172 = vpow2.f32 %v583_v5 }
 0x25f   : > { %v562_v3 = vsub.f32 %v514_v35, %v542_v60  ;;  %v557_v9 = vsub.f32 %v1631_v34, %v532_v1 }
 0x261   : > { %v1669_v0 = vpop.eup %1166  ;;  %v589_v6 = vmul.f32 1.442695, %v562_v3  ;;  %v579_v13 = vmul.f32 1.442695, %v557_v9 }
 0x262   : > { %623 = vadd.xlane.f32.xlu2 %v1667_v63  ;;  %629 = vadd.xlane.f32.xlu1 %v1669_v0  ;;  %v1673_v7 = vpop.eup %1168 }
 0x263   : > { %v1675_v8 = vpop.eup %1170  ;;  %1174 = vpow2.f32 %v589_v6 }
 0x264   : > { %v1680_v15 = vpop.eup %1172  ;;  %1176 = vpow2.f32 %v579_v13 }
 0x266   : > { %v538_v4 = vpop.xlane.xlu1 %537  ;;  %v528_v10 = vpop.xlane.xlu2 %527 }
 0x267   : > { %v560_v11 = vsub.f32 %v512_v37, %v538_v4  ;;  %v555_v17 = vsub.f32 %v1636_v36, %v528_v10 }
 0x269   : > { %v585_v14 = vmul.f32 1.442695, %v560_v11  ;;  %v1682_v16 = vpop.eup %1174  ;;  %v575_v21 = vmul.f32 1.442695, %v555_v17 }
 0x26a   : > { %619 = vadd.xlane.f32.xlu2 %v1675_v8  ;;  %625 = vadd.xlane.f32.xlu1 %v1673_v7  ;;  %v1688_v23 = vpop.eup %1176 }
 0x26b   : > { %1178 = vpow2.f32 %v585_v14 }
 0x26c   : > { %1180 = vpow2.f32 %v575_v21 }
 0x26e   : > { %v534_v12 = vpop.xlane.xlu1 %533  ;;  %v524_v19 = vpop.xlane.xlu2 %523 }
 0x26f   : > { %v558_v18 = vsub.f32 %v1644_v40, %v534_v12  ;;  %v553_v25 = vsub.f32 %v1641_v39, %v524_v19 }
 0x271   : > { %v581_v22 = vmul.f32 1.442695, %v558_v18  ;;  %v1690_v24 = vpop.eup %1178  ;;  %v571_v27 = vmul.f32 1.442695, %v553_v25 }
 0x272   : > { %615 = vadd.xlane.f32.xlu2 %v1680_v15  ;;  %621 = vadd.xlane.f32.xlu1 %v1682_v16  ;;  %v1696_v31 = vpop.eup %1180 }
 0x273   : > { %1182 = vpow2.f32 %v581_v22 }
 0x274   : > { %1184 = vpow2.f32 %v571_v27 }
 0x276   : > { %v530_v20 = vpop.xlane.xlu1 %529  ;;  %v520_v29 = vpop.xlane.xlu2 %519 }
 0x277   : > { %v556_v26 = vsub.f32 %v1652_v42, %v530_v20  ;;  %v551_v33 = vsub.f32 %v1649_v41, %v520_v29 }
 0x279   : > { %v577_v30 = vmul.f32 1.442695, %v556_v26  ;;  %v1698_v32 = vpop.eup %1182  ;;  %v567_v35 = vmul.f32 1.442695, %v551_v33 }
 0x27a   : > { %611 = vadd.xlane.f32.xlu2 %v1688_v23  ;;  %617 = vadd.xlane.f32.xlu1 %v1690_v24  ;;  %v1704_v37 = vpop.eup %1184 }
 0x27b   : > { %1186 = vpow2.f32 %v577_v30 }
 0x27c   : > { %1188 = vpow2.f32 %v567_v35 }
 0x27e   : > { %v526_v28 = vpop.xlane.xlu1 %525 }
 0x27f   : > { %v554_v34 = vsub.f32 %v1657_v43, %v526_v28 }
 0x281   : > { %v573_v36 = vmul.f32 1.442695, %v554_v34  ;;  %v1706_v39 = vpop.eup %1186 }
 0x282   : > { %607 = vadd.xlane.f32.xlu2 %v1696_v31  ;;  %613 = vadd.xlane.f32.xlu1 %v1698_v32  ;;  %v1711_v42 = vpop.eup %1188 }
 0x283   : > { %1190 = vpow2.f32 %v573_v36 }
 0x286   : > { %v522_v38 = vpop.xlane.xlu1 %521 }
 0x287   : > { %v552_v40 = vsub.f32 %v1661_v44, %v522_v38 }
 0x289   : > { %v569_v41 = vmul.f32 1.442695, %v552_v40  ;;  %v1713_v43 = vpop.eup %1190 }
 0x28a   : > { %603 = vadd.xlane.f32.xlu2 %v1704_v37  ;;  %609 = vadd.xlane.f32.xlu1 %v1706_v39 }
 0x28b   : > { %1192 = vpow2.f32 %v569_v41 }
 0x291   : > { %v1717_v45 = vpop.eup %1192 }
 0x292   : > { %599 = vadd.xlane.f32.xlu2 %v1711_v42  ;;  %605 = vadd.xlane.f32.xlu1 %v1713_v43 }
 0x29a   : > { %601 = vadd.xlane.f32.xlu1 %v1717_v45 }
 0x2cd   : > { %v628_v46 = vpop.xlane.xlu2 %627 }
 0x2ce   : > { %1194 = vrcp.f32 %v628_v46 }
 0x2d4   : > { %v1195_v44 = vpop.eup %1194 }
 0x2d5   : > { %v624_v47 = vpop.xlane.xlu2 %623  ;;  %v630_v48 = vpop.xlane.xlu1 %629  ;;  %v661_v49 = vmul.f32 %v1195_v44, %v1664_v57 }
 0x2d6   : > { %1196 = vrcp.f32 %v630_v48 }
 0x2d7   : > { %1198 = vrcp.f32 %v624_v47  ;;  %v677_v54 = vpack.c.bf16 %v661_v49, %v661_v49 }
 0x2d9   : > { %v733_v59 = vunpack.c.l.b16 %v677_v54 }
 0x2dc   : > { %v1197_v50 = vpop.eup %1196 }
 0x2dd   : > { %v620_v51 = vpop.xlane.xlu2 %619  ;;  %v626_v52 = vpop.xlane.xlu1 %625  ;;  %v662_v53 = vmul.f32 %v1197_v50, %v1669_v0 }
 0x2de   : > { %v1199_v55 = vpop.eup %1198  ;;  %1200 = vrcp.f32 %v626_v52 }
 0x2df   : > { %v678_v56 = vpack.c.bf16 %v662_v53, %v662_v53  ;;  %v1066_v58 = vpack.c.bf16 %v662_v53, %v661_v49  ;;  %1202 = vrcp.f32 %v620_v51  ;;  %v659_v57 = vmul.f32 %v1199_v55, %v1667_v63 }
 0x2e1   : > { %1074 = vst [vmem:[%s1723_s10 + $0x38] sm:$0xff] %v1066_v58   ;;  %v734_v60 = vunpack.c.l.b16 %v678_v56  ;;  %v675_v3 = vpack.c.bf16 %v659_v57, %v659_v57 }
 0x2e3   : > { %v742_v61 = vpack.c.b16 %v734_v60, %v733_v59  ;;  %v731_v9 = vunpack.c.l.b16 %v675_v3 }
 0x2e4   : > { %v1201_v62 = vpop.eup %1200 }
 0x2e5   : > { %v616_v1 = vpop.xlane.xlu2 %615  ;;  %v622_v2 = vpop.xlane.xlu1 %621  ;;  %751 = vmatpush.bf16.xpose.msra.mxu1 %v742_v61  ;;  %v660_v0 = vmul.f32 %v1201_v62, %v1673_v7 }
 0x2e6   : > { %v1203_v4 = vpop.eup %1202  ;;  %1204 = vrcp.f32 %v622_v2 }
 0x2e7   : > { %v676_v5 = vpack.c.bf16 %v660_v0, %v660_v0  ;;  %v1061_v6 = vpack.c.bf16 %v660_v0, %v659_v57  ;;  %1206 = vrcp.f32 %v616_v1  ;;  %v657_v11 = vmul.f32 %v1203_v4, %v1675_v8 }
 0x2e9   : > { %1073 = vst [vmem:[%s1723_s10 + $0x30] sm:$0xff] %v1061_v6   ;;  %v732_v10 = vunpack.c.l.b16 %v676_v5  ;;  %v673_v7 = vpack.c.bf16 %v657_v11, %v657_v11 }
 0x2eb   : > { %v741_v63 = vpack.c.b16 %v732_v10, %v731_v9  ;;  %v729_v21 = vunpack.c.l.b16 %v673_v7  ;;  %v1025_v7 = vld [vmem:[%s1605_s17] sm:$0xff] }
 0x2ec   : > { %v1205_v12 = vpop.eup %1204 }
 0x2ed   : > { %v612_v13 = vpop.xlane.xlu2 %611  ;;  %v618_v14 = vpop.xlane.xlu1 %617  ;;  %752 = vmatpush.bf16.xpose.msra.mxu1 %v741_v63  ;;  %v658_v17 = vmul.f32 %v1205_v12, %v1682_v16 }
 0x2ee   : > { %v1207_v18 = vpop.eup %1206  ;;  %1208 = vrcp.f32 %v618_v14 }
 0x2ef   : > { %v674_v19 = vpack.c.bf16 %v658_v17, %v658_v17  ;;  %v1056_v20 = vpack.c.bf16 %v658_v17, %v657_v11  ;;  %1210 = vrcp.f32 %v612_v13  ;;  %v655_v25 = vmul.f32 %v1207_v18, %v1680_v15 }
 0x2f1   : > { %1072 = vst [vmem:[%s1723_s10 + $0x28] sm:$0xff] %v1056_v20   ;;  %v730_v22 = vunpack.c.l.b16 %v674_v19  ;;  %v671_v16 = vpack.c.bf16 %v655_v25, %v655_v25 }
 0x2f3   : > { %v740_v8 = vpack.c.b16 %v730_v22, %v729_v21  ;;  %v727_v35 = vunpack.c.l.b16 %v671_v16 }
 0x2f4   : > { %v1209_v26 = vpop.eup %1208 }
 0x2f5   : > { %v608_v27 = vpop.xlane.xlu2 %607  ;;  %v614_v28 = vpop.xlane.xlu1 %613  ;;  %753 = vmatpush.bf16.xpose.msra.mxu1 %v740_v8  ;;  %v656_v29 = vmul.f32 %v1209_v26, %v1690_v24 }
 0x2f6   : > { %v1211_v30 = vpop.eup %1210  ;;  %1212 = vrcp.f32 %v614_v28 }
 0x2f7   : > { %v672_v33 = vpack.c.bf16 %v656_v29, %v656_v29  ;;  %v1051_v34 = vpack.c.bf16 %v656_v29, %v655_v25  ;;  %1214 = vrcp.f32 %v608_v27  ;;  %v653_v38 = vmul.f32 %v1211_v30, %v1688_v23 }
 0x2f9   : > { %1071 = vst [vmem:[%s1723_s10 + $0x20] sm:$0xff] %v1051_v34   ;;  %v728_v36 = vunpack.c.l.b16 %v672_v33  ;;  %v669_v24 = vpack.c.bf16 %v653_v38, %v653_v38 }
 0x2fb   : > { %v739_v15 = vpack.c.b16 %v728_v36, %v727_v35  ;;  %v725_v50 = vunpack.c.l.b16 %v669_v24 }
 0x2fc   : > { %v1213_v40 = vpop.eup %1212 }
 0x2fd   : > { %v604_v41 = vpop.xlane.xlu2 %603  ;;  %v610_v46 = vpop.xlane.xlu1 %609  ;;  %754 = vmatpush.bf16.xpose.msra.mxu1 %v739_v15  ;;  %v654_v47 = vmul.f32 %v1213_v40, %v1698_v32 }
 0x2fe   : > { %v1215_v48 = vpop.eup %1214  ;;  %1216 = vrcp.f32 %v610_v46 }
 0x2ff   : > { %v670_v44 = vpack.c.bf16 %v654_v47, %v654_v47  ;;  %v1046_v49 = vpack.c.bf16 %v654_v47, %v653_v38  ;;  %1218 = vrcp.f32 %v604_v41  ;;  %v651_v52 = vmul.f32 %v1215_v48, %v1696_v31 }
 0x301   : > { %1070 = vst [vmem:[%s1723_s10 + $0x18] sm:$0xff] %v1046_v49   ;;  %v726_v51 = vunpack.c.l.b16 %v670_v44  ;;  %v667_v32 = vpack.c.bf16 %v651_v52, %v651_v52 }
 0x303   : > { %v738_v23 = vpack.c.b16 %v726_v51, %v725_v50  ;;  %v723_v57 = vunpack.c.l.b16 %v667_v32 }
 0x304   : > { %v1217_v53 = vpop.eup %1216 }
 0x305   : > { %v600_v54 = vpop.xlane.xlu2 %599  ;;  %v606_v55 = vpop.xlane.xlu1 %605  ;;  %755 = vmatpush.bf16.xpose.msra.mxu1 %v738_v23  ;;  %v652_v56 = vmul.f32 %v1217_v53, %v1706_v39 }
 0x306   : > { %v1219_v58 = vpop.eup %1218  ;;  %1220 = vrcp.f32 %v606_v55 }
 0x307   : > { %1222 = vrcp.f32 %v600_v54  ;;  %v668_v59 = vpack.c.bf16 %v652_v56, %v652_v56  ;;  %v1041_v60 = vpack.c.bf16 %v652_v56, %v651_v52  ;;  %v649_v62 = vmul.f32 %v1219_v58, %v1704_v37 }
 0x309   : > { %1069 = vst [vmem:[%s1723_s10 + $0x10] sm:$0xff] %v1041_v60   ;;  %v724_v61 = vunpack.c.l.b16 %v668_v59  ;;  %v665_v3 = vpack.c.bf16 %v649_v62, %v649_v62 }
 0x30b   : > { %v737_v31 = vpack.c.b16 %v724_v61, %v723_v57  ;;  %v721_v9 = vunpack.c.l.b16 %v665_v3 }
 0x30c   : > { %v1221_v1 = vpop.eup %1220 }
 0x30d   : > { %v602_v2 = vpop.xlane.xlu1 %601  ;;  %v1223_v0 = vpop.eup %1222  ;;  %756 = vmatpush.bf16.xpose.msra.mxu1 %v737_v31  ;;  %v650_v39 = vmul.f32 %v1221_v1, %v1713_v43 }
 0x30e   : > { %1224 = vrcp.f32 %v602_v2  ;;  %v647_v6 = vmul.f32 %v1223_v0, %v1711_v42 }
 0x30f   : > { %v666_v4 = vpack.c.bf16 %v650_v39, %v650_v39  ;;  %v1036_v5 = vpack.c.bf16 %v650_v39, %v649_v62 }
 0x310   : > { %v663_v12 = vpack.c.bf16 %v647_v6, %v647_v6 }
 0x311   : > { %1068 = vst [vmem:[%s1723_s10 + $0x8] sm:$0xff] %v1036_v5   ;;  %v722_v10 = vunpack.c.l.b16 %v666_v4 }
 0x312   : > { %v719_v14 = vunpack.c.l.b16 %v663_v12 }
 0x313   : > { %v736_v11 = vpack.c.b16 %v722_v10, %v721_v9 }
 0x314   : > { %v1225_v37 = vpop.eup %1224 }
 0x315   : > { %v648_v63 = vmul.f32 %v1225_v37, %v1717_v45  ;;  %757 = vmatpush.bf16.xpose.msra.mxu1 %v736_v11 }
 0x317   : > { %v664_v13 = vpack.c.bf16 %v648_v63, %v648_v63  ;;  %v1031_v43 = vpack.c.bf16 %v648_v63, %v647_v6 }
 0x319   : > { %1032 = vst [vmem:[%s1723_s10] sm:$0xff] %v1031_v43   ;;  %v720_v17 = vunpack.c.l.b16 %v664_v13 }
 0x31b   : > { %v735_v42 = vpack.c.b16 %v720_v17, %v719_v14 }
 0x31d   : > { %758 = vmatpush.bf16.xpose.msra.mxu1 %v735_v42 }
 0x324   : > { %759 = vmatmul.bf16.vlgmr.msra.gmra.mxu1 %v1025_v7 }
 0x325   : > { %1343 = shalt.err (!%p1340_p0)
}
 0x326   : > { %s1440_s18 = smov 64   ;;  %s1441_s29 = smov 4  }
 0x327   : > { %1083 = dma.vmem_to_hbm [thread:$0]  (%p1537_p9), %s814_s22, 1024, %s816_s19, %s781_s20, %s1440_s18, %s1440_s18, %s1441_s29  }
 0x328   : > { %s765_s15 = sld [smem:[#allocation2]]  ;;  %s1000_s0 = sshll.u32 %s1595_s3, 4 }
 0x329   : > { %s346_s10 = scalar_lea.vmem [#allocation8], %s1000_s0  ;;  %s1026_s30 = sshll.u32 %s1426_s26, 4 }
 0x32a   : > { %v769_v19 = vld [vmem:[%s346_s10] sm:$0xff]  ;;  %s793_s16 = scalar_lea.hbm %s1808_s5, %s1026_s30  ;;  %s388_s14 = scalar_lea.vmem [#allocation9], %s1000_s0  ;;  %v770_v25 = vld [vmem:[%s346_s10 + $0x8] sm:$0xff] }
 0x32b   : > { %s794_s21 = sshll.u32 %s388_s14, 4  ;;  %s796_s25 = sshll.u32 %s793_s16, 4  ;;  %s795_s21 = int_to_ptr.vmem [resolvable:$true] %s794_s21  ;;  %s797_s25 = int_to_ptr.hbm [resolvable:$true] %s796_s25 }
 0x32c   : > { %s776_s22 = scalar_lea.sflag [#allocation5], %s1595_s3  ;;  %s1358_s19 = sshra.s32 %s797_s25, 4  ;;  %s1359_s19 = int_to_ptr.hbm [resolvable:$true] %s1358_s19 }
 0x32d   : > { %s1360_s26 = scalar_lea.hbm %s1359_s19, 16  ;;  %s1364_s12 = scalar_lea.hbm %s1808_s5, 32 }
 0x32e   : > { %v766_v45 = vstv %s765_s15  ;;  %p1361_p1 = scmp.ne.s32.totalorder %s1359_s19, %s1360_s26  ;;  %p1365_p4 = scmp.lt.s32.totalorder %s1359_s19, %s1808_s5 }
 0x32f   : > { %p1366_p5 = scmp.lt.s32.totalorder %s1364_s12, %s1360_s26 }
 0x330   : > { %p1362_p2 = pnand %p1361_p1, %p1537_p9 }
 0x331   : > { %p1367_p6 = por %p1366_p5, %p1365_p4 }
 0x332   : > { %p1363_p3 = pneg %p1362_p2 }
 0x334   : > { %p1368_p7 = pnand %p1367_p6, %p1363_p3 }
 0x3a1   : > { %v760_v18 = vpop.f32.mrf.mxu1 }
 0x3a2   : > { %v767_v20 = vmul.f32 %v766_v45, %v760_v18 }
 0x3a4   : > { %v771_v21 = vadd.f32 %v769_v19, %v767_v20 }
 0x3a6   : > { %773 = vst [vmem:[%s388_s14] sm:$0xff] %v771_v21 }
 0x3a9   : > { %v762_v22 = vpop.f32.mrf.mxu1 }
 0x3aa   : > { %v768_v8 = vmul.f32 %v766_v45, %v762_v22 }
 0x3ac   : > { %v772_v26 = vadd.f32 %v770_v25, %v768_v8 }
 0x3ae   : > { %774 = vst [vmem:[%s388_s14 + $0x8] sm:$0xff] %v772_v26 }
 0x3af   : > { %1371 = shalt.err (!%p1368_p7)
}
 0x3b0   : > { %s1442_s3 = smov 128   ;;  %s1443_s18 = smov 8  }
 0x3b1   : > { %1082 = dma.vmem_to_hbm [thread:$0]  (%p1537_p9), %s795_s21, 256, %s797_s25, %s776_s22, %s1442_s3, %s1442_s3, %s1443_s18  }
 0x3b2 PF: > { %s1826_s29 = sld [smem:[#allocation17_spill]]  ;;  %s830_s15 = sand.u32 1, %s1414_s23  }
 0x3b3   : > { %p1097_p8 = pnand %p991_p12, %p1544_p11  ;;  %s831_s0 = scalar_lea.sflag [#allocation5], %s830_s15 }
 0x3b5   : > { %p1098_p10 = pneg %p1097_p8 }
 0x3b7   : > { %1405 = dma.done.wait (%p1098_p10), %s831_s0, 256  }
 0x3b8   : > { %1407 = vsyncadd (%p1098_p10), %s831_s0, 4294967040  ;;  %s841_s10 = scalar_lea.sflag [#allocation11], %s830_s15 }
 0x3b9   : > { %1409 = dma.done.wait (%p1098_p10), %s841_s10, 1024  }
 0x3ba   : > { %1411 = vsyncadd (%p1098_p10), %s841_s10, 4294966272  ;;  %s30_s28 = sadd.s32 1, %s1826_s29   ;;  %s1827_s11 = sld [smem:[#allocation16_spill]] }
 0x3bb   : > { %p27_p13 = scmp.ge.s32.totalorder %s30_s28, 4   ;;  %s1828_s25 = sld [smem:[#allocation19_spill]] }
 0x3bc   : > { %s1829_s30 = sld [smem:[#allocation18_spill]]  ;;  %s1830_s23 = smov %s1418_s24 }
 0x3bd   : > { %s1832_s26 = smov %s1430_s27 }
 0x3be   :  { %29 = sbr.rel (!%p27_p13) target bundleno = 13 (0xd), region = 129 }
 0x3c0   : > { %s1831_s24 = smov %s1827_s11 }
 0x3c2   : > { %s1833_s27 = smov %s1829_s30 }
 0x3c3   :  { %847 = vsyncpa [#allocation4], 1 }
 0x3c4   :  { %849 = vsyncpa [#allocation4 + $0x1], 1 }
 0x3c5   :  { %850 = vsyncpa [#allocation7], 1 }
 0x3c6   :  { %852 = vsyncpa [#allocation7 + $0x1], 1 }
 0x3c7   :  { %853 = vsyncpa [#allocation5], 1 }
 0x3c8   :  { %855 = vsyncpa [#allocation5 + $0x1], 1 }
 0x3c9   :  { %856 = vsyncpa [#allocation11], 1 }
 0x3ca   :  { %858 = vsyncpa [#allocation11 + $0x1], 1 }

</bundles_post_ra>
